<compile_context>
chip_gen: v7x
topology: tpu7x:2x2x1
jax: 0.10.0
libtpu: 0.0.40
codegen_flags: <defaults>
</compile_context>

<pallas_src>
import jax
import jax.numpy as jnp
from jax.experimental import pallas as pl
from jax.experimental.pallas import tpu as pltpu

LEAKY_SLOPE = 0.1
BN_EPS = 1e-5
LANE = 128      # TPU lane width: output feature dim padded to a multiple of this
MAX_TB = 256    # batch tile (rows per grid step); multiple of 16 (bf16 sublanes)


def _round_up(x, m):
    return (x + m - 1) // m * m


def _patch_embed_kernel(x_ref, w1_ref, b1_ref, w2_ref, b2_ref,
                        w3_ref, b3_ref, w4_ref, b4_ref, out_ref):
    """One batch tile: 4-layer MLP (BN folded into weights) + row L2-normalize."""

    def dense_lrelu(h_bf16, w_ref, b_ref):
        # bf16 x bf16 -> f32 accumulate on the MXU; bias/activation in f32 (VPU).
        h = jnp.dot(h_bf16, w_ref[...], preferred_element_type=jnp.float32)
        h = h + b_ref[...]
        return jnp.maximum(h, LEAKY_SLOPE * h)      # LeakyReLU(0.1): mul + max

    h = dense_lrelu(x_ref[...], w1_ref, b1_ref)
    h = dense_lrelu(h.astype(jnp.bfloat16), w2_ref, b2_ref)
    h = dense_lrelu(h.astype(jnp.bfloat16), w3_ref, b3_ref)
    h = jnp.dot(h.astype(jnp.bfloat16), w4_ref[...],
                preferred_element_type=jnp.float32) + b4_ref[...]

    # x / torch.norm(x, dim=1, keepdim=True).  Padded output columns of h are
    # exactly zero (zero-padded w4/b4), so they don't perturb the norm.
    inv_norm = jax.lax.rsqrt(jnp.sum(h * h, axis=1, keepdims=True))
    out_ref[...] = (h * inv_norm).astype(out_ref.dtype)


def init_params(key, input_dim, embedding_dim, num_clusters):
    """Deterministic synthetic init mirroring the torch module's shapes."""
    dims = [input_dim, 256, 128, 64, embedding_dim]
    keys = jax.random.split(key, 2 * (len(dims) - 1) + 1)
    params = {}
    for i in range(len(dims) - 1):
        fan_in, fan_out = dims[i], dims[i + 1]
        bound = 1.0 / jnp.sqrt(fan_in)
        params[f"w{i+1}"] = jax.random.uniform(
            keys[2 * i], (fan_in, fan_out), jnp.float32, -bound, bound)
        params[f"b{i+1}"] = jax.random.uniform(
            keys[2 * i + 1], (1, fan_out), jnp.float32, -bound, bound)
    # BatchNorm1d fresh-module state (gamma=1, beta=0, mean=0, var=1) folded
    # into eval-mode scale/shift: scale = gamma/sqrt(var+eps), shift = beta - mean*scale
    for i, d in enumerate([256, 128, 64], start=1):
        gamma = jnp.ones((1, d), jnp.float32)
        beta = jnp.zeros((1, d), jnp.float32)
        rmean = jnp.zeros((1, d), jnp.float32)
        rvar = jnp.ones((1, d), jnp.float32)
        scale = gamma / jnp.sqrt(rvar + BN_EPS)
        shift = beta - rmean * scale
        params[f"s{i}"] = scale
        params[f"t{i}"] = shift
    # Unused-in-forward parameter, created for parity with the torch module.
    params["cluster_centers"] = jax.random.normal(
        keys[-1], (num_clusters, embedding_dim), jnp.float32)
    return params


def _fold_and_pad(params, embedding_dim):
    """Fold eval-mode BN (scale/shift) of layers 1-3 into the next layer's
    weights/bias, zero-pad the last layer to a lane-dense width, and cast
    weights to bf16 for the MXU (biases stay f32)."""
    w1, b1 = params["w1"], params["b1"]
    w2 = params["s1"].reshape(-1, 1) * params["w2"]
    b2 = params["b2"] + params["t1"] @ params["w2"]
    w3 = params["s2"].reshape(-1, 1) * params["w3"]
    b3 = params["b3"] + params["t2"] @ params["w3"]
    w4 = params["s3"].reshape(-1, 1) * params["w4"]
    b4 = params["b4"] + params["t3"] @ params["w4"]

    out_pad = _round_up(max(embedding_dim, LANE), LANE)
    pad = out_pad - embedding_dim
    w4 = jnp.pad(w4, ((0, 0), (0, pad)))
    b4 = jnp.pad(b4, ((0, 0), (0, pad)))

    bf = lambda w: w.astype(jnp.bfloat16)
    return bf(w1), b1, bf(w2), b2, bf(w3), b3, bf(w4), b4


@jax.jit
def patch_embedding_forward(x, params):
    B, input_dim = x.shape
    embedding_dim = params["w4"].shape[1]
    w1, b1, w2, b2, w3, b3, w4, b4 = _fold_and_pad(params, embedding_dim)
    out_pad = w4.shape[1]

    # Batch tile: biggest aligned tile up to MAX_TB; pad B to a multiple of it.
    TB = min(MAX_TB, _round_up(B, 16))
    B_pad = _round_up(B, TB)
    if B_pad != B:
        x = jnp.pad(x, ((0, B_pad - B), (0, 0)))
    x = x.astype(jnp.bfloat16)          # halves x-tile DMA bytes; MXU input dtype

    grid = (B_pad // TB,)

    def tile_map(i):
        return (i, 0)

    def const_map(i):                   # weights resident across batch tiles
        return (0, 0)

    in_specs = [
        pl.BlockSpec((TB, input_dim), tile_map),
        pl.BlockSpec(w1.shape, const_map), pl.BlockSpec(b1.shape, const_map),
        pl.BlockSpec(w2.shape, const_map), pl.BlockSpec(b2.shape, const_map),
        pl.BlockSpec(w3.shape, const_map), pl.BlockSpec(b3.shape, const_map),
        pl.BlockSpec(w4.shape, const_map), pl.BlockSpec(b4.shape, const_map),
    ]
    out_specs = pl.BlockSpec((TB, out_pad), tile_map)

    wflops = input_dim * 256 + 256 * 128 + 128 * 64 + 64 * out_pad
    cost = pl.CostEstimate(
        flops=2 * B_pad * wflops,
        transcendentals=B_pad,
        bytes_accessed=(B_pad * input_dim * 2 + B_pad * out_pad * 4
                        + 2 * wflops + 4 * (256 + 128 + 64 + out_pad)),
    )

    # VMEM footprint per step is tiny (~0.1 MB weights + <0.5 MB tiles), so the
    # default scoped-VMEM limit is plenty on v5e/v6e/v7x; no vmem_limit_bytes.
    out = pl.pallas_call(
        _patch_embed_kernel,
        out_shape=jax.ShapeDtypeStruct((B_pad, out_pad), jnp.float32),
        grid_spec=pltpu.PrefetchScalarGridSpec(
            num_scalar_prefetch=0,
            grid=grid,
            in_specs=in_specs,
            out_specs=out_specs,
        ),
        compiler_params=pltpu.CompilerParams(
            dimension_semantics=("parallel",),   # batch tiles across v7x's 2 TCs
        ),
        cost_estimate=cost,
    )(x, w1, b1, w2, b2, w3, b3, w4, b4)

    return out[:B, :embedding_dim]


def reference_forward(x, params):
    """Pure-JAX f32 reference matching the torch module's eval forward."""
    h = x.astype(jnp.float32)
    for i in (1, 2, 3):
        h = h @ params[f"w{i}"] + params[f"b{i}"]
        h = jnp.where(h > 0, h, LEAKY_SLOPE * h)
        h = h * params[f"s{i}"] + params[f"t{i}"]
    h = h @ params["w4"] + params["b4"]
    return h / jnp.sqrt(jnp.sum(h * h, axis=1, keepdims=True))


if __name__ == "__main__":
    key = jax.random.PRNGKey(0)
    k_x, k_p = jax.random.split(key)

    B = 8
    input_dim = 32
    embedding_dim = 16
    num_clusters = 4

    x = jax.random.normal(k_x, (B, input_dim), jnp.float32)
    params = init_params(k_p, input_dim, embedding_dim, num_clusters)

    out = patch_embedding_forward(x, params)
    out = jax.block_until_ready(out)

    ref = reference_forward(x, params)
    assert out.shape == (B, embedding_dim)
    # bf16 matmul inputs (f32 accumulation) -> looser tolerance than pure f32.
    assert jnp.max(jnp.abs(out - ref)) < 3e-2, "mismatch vs. JAX reference"

    print("KERNEL_OK")
</pallas_src>

<mosaic_0001>
module attributes {stable_mosaic.version = 11 : i64} {
  func.func @_patch_embed_kernel(%arg0: i32, %arg1: memref<16x32xbf16, #tpu.memory_space<vmem>>, %arg2: memref<32x256xbf16, #tpu.memory_space<vmem>>, %arg3: memref<1x256xf32, #tpu.memory_space<vmem>>, %arg4: memref<256x128xbf16, #tpu.memory_space<vmem>>, %arg5: memref<1x128xf32, #tpu.memory_space<vmem>>, %arg6: memref<128x64xbf16, #tpu.memory_space<vmem>>, %arg7: memref<1x64xf32, #tpu.memory_space<vmem>>, %arg8: memref<64x128xbf16, #tpu.memory_space<vmem>>, %arg9: memref<1x128xf32, #tpu.memory_space<vmem>>, %arg10: memref<16x128xf32, #tpu.memory_space<vmem>>) attributes {dimension_semantics = [#tpu.dimension_semantics<parallel>], iteration_bounds = array<i64: 1>, scalar_prefetch = 0 : i64, scratch_operands = 0 : i64, tpu.core_type = #tpu.core_type<tc>, window_params = [{transform_indices = @transform_0, window_bounds = array<i64: 16, 32>}, {pipeline_mode = #tpu.pipeline_mode<synchronous>, transform_indices = @transform_1, window_bounds = array<i64: 32, 256>}, {pipeline_mode = #tpu.pipeline_mode<synchronous>, transform_indices = @transform_2, window_bounds = array<i64: 1, 256>}, {pipeline_mode = #tpu.pipeline_mode<synchronous>, transform_indices = @transform_3, window_bounds = array<i64: 256, 128>}, {pipeline_mode = #tpu.pipeline_mode<synchronous>, transform_indices = @transform_4, window_bounds = array<i64: 1, 128>}, {pipeline_mode = #tpu.pipeline_mode<synchronous>, transform_indices = @transform_5, window_bounds = array<i64: 128, 64>}, {pipeline_mode = #tpu.pipeline_mode<synchronous>, transform_indices = @transform_6, window_bounds = array<i64: 1, 64>}, {pipeline_mode = #tpu.pipeline_mode<synchronous>, transform_indices = @transform_7, window_bounds = array<i64: 64, 128>}, {pipeline_mode = #tpu.pipeline_mode<synchronous>, transform_indices = @transform_8, window_bounds = array<i64: 1, 128>}, {transform_indices = @transform_9, window_bounds = array<i64: 16, 128>}]} {
    %c0 = arith.constant 0 : index
    %c0_0 = arith.constant 0 : index
    %0 = vector.load %arg1[%c0, %c0_0] : memref<16x32xbf16, #tpu.memory_space<vmem>>, vector<16x32xbf16>
    %c0_1 = arith.constant 0 : index
    %c0_2 = arith.constant 0 : index
    %1 = vector.load %arg2[%c0_1, %c0_2] : memref<32x256xbf16, #tpu.memory_space<vmem>>, vector<32x256xbf16>
    %cst = arith.constant dense<0.000000e+00> : vector<16x256xf32>
    %2 = tpu.matmul %0, %1, %cst {dimension_numbers = #tpu.dot_dimension_numbers<[1], [0], [0], [1], [0, 0, 1, 1], [], []>} : vector<16x32xbf16>, vector<32x256xbf16>, vector<16x256xf32> -> vector<16x256xf32>
    %c0_3 = arith.constant 0 : index
    %c0_4 = arith.constant 0 : index
    %3 = vector.load %arg3[%c0_3, %c0_4] : memref<1x256xf32, #tpu.memory_space<vmem>>, vector<1x256xf32>
    %4 = vector.broadcast %3 : vector<1x256xf32> to vector<16x256xf32>
    %5 = arith.addf %2, %4 : vector<16x256xf32>
    %cst_5 = arith.constant 1.000000e-01 : f32
    %6 = vector.broadcast %cst_5 : f32 to vector<16x256xf32>
    %7 = arith.mulf %6, %5 : vector<16x256xf32>
    %8 = arith.maximumf %5, %7 : vector<16x256xf32>
    %9 = arith.truncf %8 : vector<16x256xf32> to vector<16x256xbf16>
    %c0_6 = arith.constant 0 : index
    %c0_7 = arith.constant 0 : index
    %10 = vector.load %arg4[%c0_6, %c0_7] : memref<256x128xbf16, #tpu.memory_space<vmem>>, vector<256x128xbf16>
    %cst_8 = arith.constant dense<0.000000e+00> : vector<16x128xf32>
    %11 = tpu.matmul %9, %10, %cst_8 {dimension_numbers = #tpu.dot_dimension_numbers<[1], [0], [0], [1], [0, 0, 1, 1], [], []>} : vector<16x256xbf16>, vector<256x128xbf16>, vector<16x128xf32> -> vector<16x128xf32>
    %c0_9 = arith.constant 0 : index
    %c0_10 = arith.constant 0 : index
    %12 = vector.load %arg5[%c0_9, %c0_10] : memref<1x128xf32, #tpu.memory_space<vmem>>, vector<1x128xf32>
    %13 = vector.broadcast %12 : vector<1x128xf32> to vector<16x128xf32>
    %14 = arith.addf %11, %13 : vector<16x128xf32>
    %cst_11 = arith.constant 1.000000e-01 : f32
    %15 = vector.broadcast %cst_11 : f32 to vector<16x128xf32>
    %16 = arith.mulf %15, %14 : vector<16x128xf32>
    %17 = arith.maximumf %14, %16 : vector<16x128xf32>
    %18 = arith.truncf %17 : vector<16x128xf32> to vector<16x128xbf16>
    %c0_12 = arith.constant 0 : index
    %c0_13 = arith.constant 0 : index
    %19 = vector.load %arg6[%c0_12, %c0_13] : memref<128x64xbf16, #tpu.memory_space<vmem>>, vector<128x64xbf16>
    %cst_14 = arith.constant dense<0.000000e+00> : vector<16x64xf32>
    %20 = tpu.matmul %18, %19, %cst_14 {dimension_numbers = #tpu.dot_dimension_numbers<[1], [0], [0], [1], [0, 0, 1, 1], [], []>} : vector<16x128xbf16>, vector<128x64xbf16>, vector<16x64xf32> -> vector<16x64xf32>
    %c0_15 = arith.constant 0 : index
    %c0_16 = arith.constant 0 : index
    %21 = vector.load %arg7[%c0_15, %c0_16] : memref<1x64xf32, #tpu.memory_space<vmem>>, vector<1x64xf32>
    %22 = vector.broadcast %21 : vector<1x64xf32> to vector<16x64xf32>
    %23 = arith.addf %20, %22 : vector<16x64xf32>
    %cst_17 = arith.constant 1.000000e-01 : f32
    %24 = vector.broadcast %cst_17 : f32 to vector<16x64xf32>
    %25 = arith.mulf %24, %23 : vector<16x64xf32>
    %26 = arith.maximumf %23, %25 : vector<16x64xf32>
    %27 = arith.truncf %26 : vector<16x64xf32> to vector<16x64xbf16>
    %c0_18 = arith.constant 0 : index
    %c0_19 = arith.constant 0 : index
    %28 = vector.load %arg8[%c0_18, %c0_19] : memref<64x128xbf16, #tpu.memory_space<vmem>>, vector<64x128xbf16>
    %cst_20 = arith.constant dense<0.000000e+00> : vector<16x128xf32>
    %29 = tpu.matmul %27, %28, %cst_20 {dimension_numbers = #tpu.dot_dimension_numbers<[1], [0], [0], [1], [0, 0, 1, 1], [], []>} : vector<16x64xbf16>, vector<64x128xbf16>, vector<16x128xf32> -> vector<16x128xf32>
    %c0_21 = arith.constant 0 : index
    %c0_22 = arith.constant 0 : index
    %30 = vector.load %arg9[%c0_21, %c0_22] : memref<1x128xf32, #tpu.memory_space<vmem>>, vector<1x128xf32>
    %31 = vector.broadcast %30 : vector<1x128xf32> to vector<16x128xf32>
    %32 = arith.addf %29, %31 : vector<16x128xf32>
    %33 = arith.mulf %32, %32 : vector<16x128xf32>
    %cst_23 = arith.constant dense<0.000000e+00> : vector<16xf32>
    %34 = vector.multi_reduction <add>, %33, %cst_23 [1] : vector<16x128xf32> to vector<16xf32>
    %35 = vector.shape_cast %34 : vector<16xf32> to vector<16x1xf32>
    %36 = math.rsqrt %35 : vector<16x1xf32>
    %37 = vector.broadcast %36 : vector<16x1xf32> to vector<16x128xf32>
    %38 = arith.mulf %32, %37 : vector<16x128xf32>
    %c0_24 = arith.constant 0 : index
    %c0_25 = arith.constant 0 : index
    %39 = vector.load %arg10[%c0_24, %c0_25] : memref<16x128xf32, #tpu.memory_space<vmem>>, vector<16x128xf32>
    tpu.vector_store %arg10[%c0_24, %c0_25], %38 {strides = array<i32>} : memref<16x128xf32, #tpu.memory_space<vmem>>, vector<16x128xf32>,
    return
  }
  func.func @transform_0(%arg0: i32) -> (i32, i32) {
    %c0_i32 = arith.constant 0 : i32
    %c0_i32_0 = arith.constant 0 : i32
    return %arg0, %c0_i32 : i32, i32
  }
  func.func @transform_1(%arg0: i32) -> (i32, i32) {
    %c0_i32 = arith.constant 0 : i32
    %c0_i32_0 = arith.constant 0 : i32
    %c0_i32_1 = arith.constant 0 : i32
    return %c0_i32, %c0_i32_0 : i32, i32
  }
  func.func @transform_2(%arg0: i32) -> (i32, i32) {
    %c0_i32 = arith.constant 0 : i32
    %c0_i32_0 = arith.constant 0 : i32
    %c0_i32_1 = arith.constant 0 : i32
    return %c0_i32, %c0_i32_0 : i32, i32
  }
  func.func @transform_3(%arg0: i32) -> (i32, i32) {
    %c0_i32 = arith.constant 0 : i32
    %c0_i32_0 = arith.constant 0 : i32
    %c0_i32_1 = arith.constant 0 : i32
    return %c0_i32, %c0_i32_0 : i32, i32
  }
  func.func @transform_4(%arg0: i32) -> (i32, i32) {
    %c0_i32 = arith.constant 0 : i32
    %c0_i32_0 = arith.constant 0 : i32
    %c0_i32_1 = arith.constant 0 : i32
    return %c0_i32, %c0_i32_0 : i32, i32
  }
  func.func @transform_5(%arg0: i32) -> (i32, i32) {
    %c0_i32 = arith.constant 0 : i32
    %c0_i32_0 = arith.constant 0 : i32
    %c0_i32_1 = arith.constant 0 : i32
    return %c0_i32, %c0_i32_0 : i32, i32
  }
  func.func @transform_6(%arg0: i32) -> (i32, i32) {
    %c0_i32 = arith.constant 0 : i32
    %c0_i32_0 = arith.constant 0 : i32
    %c0_i32_1 = arith.constant 0 : i32
    return %c0_i32, %c0_i32_0 : i32, i32
  }
  func.func @transform_7(%arg0: i32) -> (i32, i32) {
    %c0_i32 = arith.constant 0 : i32
    %c0_i32_0 = arith.constant 0 : i32
    %c0_i32_1 = arith.constant 0 : i32
    return %c0_i32, %c0_i32_0 : i32, i32
  }
  func.func @transform_8(%arg0: i32) -> (i32, i32) {
    %c0_i32 = arith.constant 0 : i32
    %c0_i32_0 = arith.constant 0 : i32
    %c0_i32_1 = arith.constant 0 : i32
    return %c0_i32, %c0_i32_0 : i32, i32
  }
  func.func @transform_9(%arg0: i32) -> (i32, i32) {
    %c0_i32 = arith.constant 0 : i32
    %c0_i32_0 = arith.constant 0 : i32
    return %arg0, %c0_i32 : i32, i32
  }
}

</mosaic_0001>

<bundles_post_ra>
// kernel: patch_embedding_forward.1
= control target key start
LH: loop header
LB: loop body
LE: loop exit
PB: predicated region body
PF: predicated region fallthrough
CT: control target
= control target key end

     0   :  { %v679_v1 = vmov 0   ;;  %vm76_vm0 = vcmask 261120   ;;  %v680_v22 = vmov 0.0   ;;  %v41_v28 = vlaneseq  ;;  %s863_s1 = inlined_call_operand.vmem [shape: bf16[32,256], index: 1, kind: input, shape index: {}]   ;;  %s864_s0 = inlined_call_operand.vmem [shape: bf16[16,32], index: 0, kind: input, shape index: {}]   ;;  %s865_s3 = inlined_call_operand.vmem [shape: bf16[256,128], index: 3, kind: input, shape index: {}]   ;;  %s866_s5 = inlined_call_operand.vmem [shape: bf16[128,64], index: 5, kind: input, shape index: {}]   ;;  %s867_s2 = inlined_call_operand.vmem [shape: f32[1,256], index: 2, kind: input, shape index: {}]   ;;  %s868_s7 = inlined_call_operand.vmem [shape: bf16[64,128], index: 7, kind: input, shape index: {}]   ;;  %s869_s4 = inlined_call_operand.vmem [shape: f32[1,128], index: 4, kind: input, shape index: {}]   ;;  %s870_s6 = inlined_call_operand.vmem [shape: f32[1,64], index: 6, kind: input, shape index: {}]   ;;  %s871_s8 = inlined_call_operand.vmem [shape: f32[1,128], index: 8, kind: input, shape index: {}]   ;;  %s872_s9 = inlined_call_operand.vmem [shape: f32[16,128], index: 9, kind: output, shape index: {}]  }
   0x1   :  { %v640_v0 = vld [vmem:[%s863_s1 + $0x4] ss:$8 sps:$4 sm:$0xff]   ;;  %112 = vmatprep.mubr.bf16.mxu0 %v679_v1  ;;  %v642_v2 = vld [vmem:[%s863_s1] ss:$8 sps:$4 sm:$0xff]   ;;  %v643_v3 = vld [vmem:[%s863_s1 + $0x14] ss:$8 sps:$4 sm:$0xff]  }
   0x2   :  { %80 = vmatprep.subr.bf16.mxu0 %v640_v0  ;;  %v645_v4 = vld [vmem:[%s863_s1 + $0x10] ss:$8 sps:$4 sm:$0xff]   ;;  %v646_v5 = vld [vmem:[%s864_s0] sm:$0xff]   ;;  %v649_v8 = vld [vmem:[%s865_s3 + $0x48] sm:$0xff]   ;;  %v42_v29 = vshrl.u32 %v41_v28, 7  ;;  %vm681_vm1 = vmmov 0  }
   0x3   :  { %81 = vmatpush1.bf16.msra.mxu0 %v642_v2  ;;  %v647_v6 = vld [vmem:[%s865_s3 + $0x40] sm:$0xff]   ;;  %v650_v9 = vld [vmem:[%s865_s3 + $0x8] sm:$0xff]   ;;  %v651_v10 = vld [vmem:[%s865_s3 + $0x50] sm:$0xff]   ;;  %vm470_vm2 = vcmask 523264  }
   0x4   :  { %82 = vmatprep.subr.bf16.mxu0 %v643_v3  ;;  %v648_v7 = vld [vmem:[%s865_s3] sm:$0xff]   ;;  %569 = vmatprep.subr.bf16.mxu1 %v647_v6  ;;  %v652_v11 = vld [vmem:[%s865_s3 + $0x10] sm:$0xff]   ;;  %v653_v12 = vld [vmem:[%s865_s3 + $0x58] sm:$0xff]   ;;  %v43_v30 = vsub.s32 0, %v42_v29  ;;  %v47_v32 = vsub.s32 1, %v42_v29 }
   0x5   :  { %570 = vmatpush3.bf16.msra.mxu1 %v648_v7  ;;  %v654_v13 = vld [vmem:[%s865_s3 + $0x18] sm:$0xff]   ;;  %v655_v14 = vld [vmem:[%s865_s3 + $0x60] sm:$0xff]   ;;  %v657_v16 = vld [vmem:[%s865_s3 + $0x68] sm:$0xff]  }
   0x6   :  { %571 = vmatprep.subr.bf16.mxu1 %v649_v8  ;;  %v656_v15 = vld [vmem:[%s865_s3 + $0x20] sm:$0xff]   ;;  %v658_v17 = vld [vmem:[%s865_s3 + $0x28] sm:$0xff]   ;;  %v659_v18 = vld [vmem:[%s865_s3 + $0x70] sm:$0xff]  }
   0x7   :  { %83 = vmatpush1.bf16.msra.mxu0 %v645_v4  ;;  %v660_v19 = vld [vmem:[%s865_s3 + $0x30] sm:$0xff]   ;;  %v661_v20 = vld [vmem:[%s865_s3 + $0x78] sm:$0xff]   ;;  %v663_v23 = vld [vmem:[%s866_s5] sm:$0xff]  }
   0x8   :  { %v662_v21 = vld [vmem:[%s865_s3 + $0x38] sm:$0xff]   ;;  %605 = vmatprep.subr.bf16.mxu0 %v680_v22  ;;  %v664_v24 = vld [vmem:[%s866_s5 + $0x8] sm:$0xff]   ;;  %v665_v25 = vld [vmem:[%s866_s5 + $0x10] sm:$0xff]  }
   0x9   :  { %572 = vmatpush3.bf16.msra.mxu1 %v650_v9  ;;  %v666_v26 = vld [vmem:[%s866_s5 + $0x18] sm:$0xff]   ;;  %v667_v27 = vld [vmem:[%s866_s5 + $0x20] sm:$0xff]   ;;  %v668_v53 = vld [vmem:[%s866_s5 + $0x28] sm:$0xff]  }
   0xa   :  { %536 = vmatmul.mubr.msk.bf16.vlgmr.msra.gmra.mrb[0].mxu0 %vm76_vm0, %v646_v5  ;;  %573 = vmatprep.subr.bf16.mxu1 %v651_v10  ;;  %v39_v31 = vld [vmem:[%s867_s2] sm:$0x3]  ;;  %v669_v54 = vld [vmem:[%s866_s5 + $0x30] sm:$0xff]   ;;  %v670_v55 = vld [vmem:[%s866_s5 + $0x38] sm:$0xff]  }
   0xb   :  { %606 = vmatpush3.bf16.msra.mxu0 %v663_v23  ;;  %v44_v33 = vrot.slane %v39_v31, %v43_v30  ;;  %v48_v34 = vrot.slane %v39_v31, %v47_v32  ;;  %621 = vmatprep.mubr.msk.bf16.mxu0 %vm681_vm1, %v680_v22  ;;  %v671_v56 = vld [vmem:[%s868_s7] sm:$0xff]   ;;  %v672_v7 = vld [vmem:[%s868_s7 + $0x8] sm:$0xff]   ;;  %v673_v8 = vld [vmem:[%s868_s7 + $0x10] sm:$0xff]  }
   0xc   :  { %607 = vmatprep.subr.bf16.mxu0 %v680_v22  ;;  %v537_v58 = vld [vmem:[%s869_s4] ss:$0 sm:$0xff]  ;;  %v674_v9 = vld [vmem:[%s868_s7 + $0x18] sm:$0xff]  }
   0xd   :  { %574 = vmatpush3.bf16.msra.mxu1 %v652_v11  ;;  %v554_v10 = vld [vmem:[%s870_s6] ss:$0 sm:$0xff] }
   0xe   :  { %575 = vmatprep.subr.bf16.mxu1 %v653_v12 }
   0xf   :  { %608 = vmatpush3.bf16.msra.mxu0 %v664_v24 }
  0x10   :  { %609 = vmatprep.subr.bf16.mxu0 %v680_v22 }
  0x11   :  { %576 = vmatpush3.bf16.msra.mxu1 %v654_v13 }
  0x12   :  { %577 = vmatprep.subr.bf16.mxu1 %v655_v14 }
  0x13   :  { %610 = vmatpush3.bf16.msra.mxu0 %v665_v25 }
  0x14   :  { %611 = vmatprep.subr.bf16.mxu0 %v680_v22 }
  0x15   :  { %578 = vmatpush3.bf16.msra.mxu1 %v656_v15 }
  0x16   :  { %579 = vmatprep.subr.bf16.mxu1 %v657_v16 }
  0x17   :  { %612 = vmatpush3.bf16.msra.mxu0 %v666_v26 }
  0x18   :  { %613 = vmatprep.subr.bf16.mxu0 %v680_v22 }
  0x19   :  { %580 = vmatpush3.bf16.msra.mxu1 %v658_v17 }
  0x1a   :  { %581 = vmatprep.subr.bf16.mxu1 %v659_v18 }
  0x1b   :  { %614 = vmatpush3.bf16.msra.mxu0 %v667_v27 }
  0x1c   :  { %615 = vmatprep.subr.bf16.mxu0 %v680_v22 }
  0x1d   :  { %582 = vmatpush3.bf16.msra.mxu1 %v660_v19 }
  0x1e   :  { %583 = vmatprep.subr.bf16.mxu1 %v661_v20 }
  0x1f   :  { %616 = vmatpush3.bf16.msra.mxu0 %v668_v53 }
  0x20   :  { %617 = vmatprep.subr.bf16.mxu0 %v680_v22 }
  0x21   :  { %584 = vmatpush3.bf16.msra.mxu1 %v662_v21 }
  0x22   :  { %625 = vmatprep.subr.bf16.mxu1 %v680_v22 }
  0x23   :  { %618 = vmatpush3.bf16.msra.mxu0 %v669_v54 }
  0x24   :  { %619 = vmatprep.subr.bf16.mxu0 %v680_v22 }
  0x27   :  { %620 = vmatpush3.bf16.msra.mxu0 %v670_v55 }
  0xdd   :  { %v114_v35 = vpop.f32.mrb[0].mxu0 }
  0xde   :  { %v115_v36 = vadd.f32 %v114_v35, %v44_v33  ;;  %v116_v37 = vpop.f32.mrb[1].mxu0 }
  0xdf   :  { %v117_v38 = vadd.f32 %v116_v37, %v48_v34  ;;  %v118_v39 = vpop.f32.mrb[2].mxu0 }
  0xe0   :  { %v123_v40 = vmul.f32 0.1, %v115_v36  ;;  %v119_v41 = vadd.f32 %v118_v39, %v44_v33  ;;  %v120_v42 = vpop.f32.mrb[3].mxu0 }
  0xe1   :  { %v124_v43 = vmul.f32 0.1, %v117_v38  ;;  %v121_v44 = vadd.f32 %v120_v42, %v48_v34 }
  0xe2   :  { %v125_v45 = vmul.f32 0.1, %v119_v41  ;;  %v127_v47 = vmax.f32 %v115_v36, %v123_v40 }
  0xe3   :  { %v126_v46 = vmul.f32 0.1, %v121_v44  ;;  %v128_v49 = vmax.f32 %v117_v38, %v124_v43 }
  0xe4   :  { %v129_v48 = vmax.f32 %v119_v41, %v125_v45 }
  0xe5   :  { %v130_v50 = vmax.f32 %v121_v44, %v126_v46 }
  0xe6   :  { %v131_v51 = vpack.c.bf16 %v129_v48, %v127_v47 }
  0xe7   :  { %v132_v52 = vpack.c.bf16 %v130_v50, %v128_v49 }
  0xe9   :  { %300 = vmatprep.mubr.bf16.mxu1 %v132_v52 }
  0xea   :  { %301 = vmatmul.mubr.bf16.vlgmr.msra.gmra.mrb[0].mxu1 %v131_v51 }
  0xeb   :  { %633 = vmatprep.mubr.msk.bf16.mxu1 %vm681_vm1, %v680_v22  ;;  %626 = vmatpush3.bf16.msra.mxu1 %v671_v56 }
  0xec   :  { %627 = vmatprep.subr.bf16.mxu1 %v680_v22 }
  0xef   :  { %628 = vmatpush3.bf16.msra.mxu1 %v672_v7 }
  0xf0   :  { %629 = vmatprep.subr.bf16.mxu1 %v680_v22 }
  0xf3   :  { %630 = vmatpush3.bf16.msra.mxu1 %v673_v8 }
  0xf4   :  { %631 = vmatprep.subr.bf16.mxu1 %v680_v22  ;;  %v563_v22 = vld [vmem:[%s871_s8] ss:$0 sm:$0xff] }
  0xf7   :  { %632 = vmatpush3.bf16.msra.mxu1 %v674_v9 }
 0x1bd   :  { %v585_v57 = vpop.f32.mrb[0].mxu1 }
 0x1be   :  { %v586_v59 = vpop.f32.mrb[1].mxu1 }
 0x1bf   :  { %v587_v60 = vadd.f32 %v586_v59, %v585_v57  ;;  %v588_v61 = vpop.f32.mrb[2].mxu1 }
 0x1c0   :  { %v589_v62 = vpop.f32.mrb[3].mxu1 }
 0x1c1   :  { %v303_v63 = vadd.f32 %v587_v60, %v537_v58  ;;  %v590_v0 = vadd.f32 %v589_v62, %v588_v61 }
 0x1c3   :  { %v309_v1 = vmul.f32 0.1, %v303_v63  ;;  %v306_v2 = vadd.f32 %v590_v0, %v537_v58 }
 0x1c5   :  { %v310_v3 = vmul.f32 0.1, %v306_v2  ;;  %v311_v4 = vmax.f32 %v303_v63, %v309_v1 }
 0x1c7   :  { %v312_v5 = vmax.f32 %v306_v2, %v310_v3 }
 0x1c9   :  { %v313_v6 = vpack.c.bf16 %v312_v5, %v311_v4 }
 0x1cb   :  { %622 = vmatmul.mubr.bf16.vlgmr.msra.gmra.mrb[4].mxu0 %v313_v6 }
 0x29e   :  { %v419_v11 = vpop.f32.mrb[4].mxu0 }
 0x29f   :  { %v420_v12 = vadd.f32 %v554_v10, %v419_v11  ;;  %v623_v13 = vpop.f32.mrb[5].mxu0 }
 0x2a0   :  { %v422_v14 = vpop.f32.mrb[6].mxu0 }
 0x2a1   :  { %v426_v15 = vmul.f32 0.1, %v420_v12  ;;  %v423_v16 = vadd.f32 %v554_v10, %v422_v14  ;;  %v624_v17 = vpop.f32.mrb[7].mxu0 }
 0x2a3   :  { %v427_v18 = vmul.f32 0.1, %v423_v16  ;;  %v428_v19 = vmax.f32 %v420_v12, %v426_v15 }
 0x2a5   :  { %v429_v20 = vmax.f32 %v423_v16, %v427_v18 }
 0x2a7   :  { %v430_v21 = vpack.c.bf16 %v429_v20, %v428_v19 }
 0x2a9   :  { %634 = vmatmul.mubr.msk.bf16.vlgmr.msra.gmra.mrb[4].mxu1 %vm470_vm2, %v430_v21 }
 0x37c   :  { %v508_v23 = vpop.f32.mrb[4].mxu1 }
 0x37d   :  { %v509_v24 = vadd.f32 %v563_v22, %v508_v23  ;;  %v635_v25 = vpop.f32.mrb[5].mxu1 }
 0x37e   :  { %v511_v26 = vpop.f32.mrb[6].mxu1 }
 0x37f   :  { %v512_v27 = vadd.f32 %v563_v22, %v511_v26  ;;  %v636_v28 = vpop.f32.mrb[7].mxu1  ;;  %v515_v29 = vmul.f32 %v509_v24, %v509_v24 }
 0x381   :  { %517 = vadd.xlane.f32.xlu0 %v515_v29  ;;  %v516_v30 = vmul.f32 %v512_v27, %v512_v27 }
 0x385   :  { %519 = vadd.xlane.f32.xlu0 %v516_v30 }
 0x40e   :  { %v518_v31 = vpop.xlane.xlu0 %517 }
 0x40f   :  { %675 = vrsqrt.f32 %v518_v31 }
 0x412   :  { %v520_v32 = vpop.xlane.xlu0 %519 }
 0x413   :  { %677 = vrsqrt.f32 %v520_v32 }
 0x419   :  { %v676_v33 = vpop.eup %675 }
 0x41a   :  { %v523_v34 = vmul.f32 %v676_v33, %v509_v24 }
 0x41c   :  { %525 = vst [vmem:[%s872_s9] sm:$0xff] %v523_v34 }
 0x41d   :  { %v678_v35 = vpop.eup %677 }
 0x41e   :  { %v524_v36 = vmul.f32 %v678_v35, %v512_v27 }
 0x420   :  { %526 = vst [vmem:[%s872_s9 + $0x8] sm:$0xff] %v524_v36 }

</bundles_post_ra>
